<compile_context>
chip_gen: v7x
topology: tpu7x:2x2x1
jax: 0.10.0
libtpu: 0.0.40
codegen_flags: <defaults>
</compile_context>

<pallas_src>
import functools

import jax
import jax.numpy as jnp
from jax.experimental import pallas as pl
from jax.experimental.pallas import tpu as pltpu

EPS = 1e-5
_VMEM_LIMIT_BYTES = 64 * 1024 * 1024  # explicit cap for the big single-block path


def _round_up(x, m):
    return ((x + m - 1) // m) * m


# ---------------------------------------------------------------------------
# Kernels
# ---------------------------------------------------------------------------

def _fused_kernel(x_ref, w_ref, g_ref, b_ref, oz_ref, oc_ref, *, d):
    """Single-block fused (Linear_z|Linear_c) -> BatchNorm1d(train) -> ReLU.

    x: (N, E) bf16, w: (E, 2D) bf16, g/b: (1, 2D) f32.
    Outputs: out_z (N, D) f32, out_c (N, D) f32.
    Linear bias omitted (cancelled exactly by train-mode BN mean subtraction).
    Two-pass variance for numerical robustness.
    """
    h = jnp.dot(x_ref[...], w_ref[...], preferred_element_type=jnp.float32)
    mean = jnp.mean(h, axis=0, keepdims=True)
    hc = h - mean
    var = jnp.mean(hc * hc, axis=0, keepdims=True)
    scale = g_ref[...] * jax.lax.rsqrt(var + EPS)
    y = jnp.maximum(hc * scale + b_ref[...], 0.0)
    oz_ref[...] = y[:, :d]
    oc_ref[...] = y[:, d:]


def _stats_kernel(x_ref, w_ref, g_ref, b_ref, scale_ref, shift_ref,
                  sum_acc, sq_acc, ref_acc, *, n_total, tile, needs_mask):
    """Phase 1 of tiled BN: accumulate per-column sum and shifted sum-of-squares
    of h = x @ W over the whole batch; on the final grid step emit the fused
    affine BN parameters scale = g*rsqrt(var+eps), shift = beta - mean*scale.

    Ragged tail rows of the last (partial) tile are masked in-kernel; no
    wrapper-side padding of x is needed.
    """
    i = pl.program_id(0)
    h = jnp.dot(x_ref[...], w_ref[...], preferred_element_type=jnp.float32)
    if needs_mask:
        row = jax.lax.broadcasted_iota(jnp.int32, h.shape, 0) + i * tile
        valid = row < n_total
        h = jnp.where(valid, h, 0.0)

    @pl.when(i == 0)
    def _():
        nv0 = min(tile, n_total)  # static: valid rows in tile 0
        ref_acc[...] = jnp.sum(h, axis=0, keepdims=True) * (1.0 / nv0)
        sum_acc[...] = jnp.zeros_like(sum_acc)
        sq_acc[...] = jnp.zeros_like(sq_acc)

    hd = h - ref_acc[...]
    if needs_mask:
        hd = jnp.where(valid, hd, 0.0)
    sum_acc[...] += jnp.sum(h, axis=0, keepdims=True)
    sq_acc[...] += jnp.sum(hd * hd, axis=0, keepdims=True)

    @pl.when(i == pl.num_programs(0) - 1)
    def _():
        inv_n = 1.0 / n_total
        mean = sum_acc[...] * inv_n
        dm = mean - ref_acc[...]
        var = jnp.maximum(sq_acc[...] * inv_n - dm * dm, 0.0)
        s = g_ref[...] * jax.lax.rsqrt(var + EPS)
        scale_ref[...] = s
        shift_ref[...] = b_ref[...] - mean * s


def _normalize_kernel(x_ref, w_ref, scale_ref, shift_ref, oz_ref, oc_ref, *, d):
    """Phase 2 of tiled BN: recompute h for this tile and apply the precomputed
    global affine (scale, shift), then ReLU. Emits the two skinny outputs."""
    h = jnp.dot(x_ref[...], w_ref[...], preferred_element_type=jnp.float32)
    y = jnp.maximum(h * scale_ref[...] + shift_ref[...], 0.0)
    oz_ref[...] = y[:, :d]
    oc_ref[...] = y[:, d:]


# ---------------------------------------------------------------------------
# Wrapper
# ---------------------------------------------------------------------------

def _pack_fused_params(params):
    """Concatenate z|c weights / gamma / beta along the output dim (no lane
    padding). Linear biases are NOT packed: they are a mathematical no-op under
    training-mode BatchNorm."""
    w = jnp.concatenate([params["w_u_z1"], params["w_u_c1"]], axis=1)  # (E, 2D)
    g = jnp.concatenate([params["gamma_u_z1"], params["gamma_u_c1"]], axis=1)
    b = jnp.concatenate([params["beta_u_z1"], params["beta_u_c1"]], axis=1)
    return w, g, b


def decomposing_network_1_forward(nodes, params, *, force_tiled=False,
                                  tile_n=4096, small_n_threshold=16384):
    """Forward pass of Decomposing_Network_1 (u=True)."""
    # enc_u modeled as a simple embedding lookup (glue in plain JAX).
    embed = jnp.take(params["embed_table"], nodes, axis=0)  # (N, E) f32
    N, E = embed.shape
    D = params["w_u_z1"].shape[1]
    d2 = 2 * D

    w, g, b = _pack_fused_params(params)
    # bf16 activations / weights into the MXU; accumulation and BN stats in f32.
    x_bf = embed.astype(jnp.bfloat16)
    w_bf = w.astype(jnp.bfloat16)

    vmem = pl.BlockSpec(memory_space=pltpu.MemorySpace.VMEM)
    out_sds = (jax.ShapeDtypeStruct((N, D), jnp.float32),
               jax.ShapeDtypeStruct((N, D), jnp.float32))

    if not force_tiled and N <= small_n_threshold:
        # Small / moderate N: one fused, single-launch kernel (x read once).
        cp = (pltpu.CompilerParams(vmem_limit_bytes=_VMEM_LIMIT_BYTES)
              if N > 4096 else None)
        out_z, out_c = pl.pallas_call(
            functools.partial(_fused_kernel, d=D),
            out_shape=out_sds,
            in_specs=[vmem, vmem, vmem, vmem],
            out_specs=(vmem, vmem),
            compiler_params=cp,
        )(x_bf, w_bf, g, b)
        return out_z, out_c, embed

    # Large N: tile the batch axis. BatchNorm statistics must be GLOBAL, so use
    # a two-phase scheme (accumulate shifted sums, then normalize per tile).
    tile = min(_round_up(tile_n, 8), _round_up(N, 8))
    n_tiles = pl.cdiv(N, tile)
    needs_mask = (N % tile) != 0

    x_spec = pl.BlockSpec((tile, E), lambda i: (i, 0))
    w_spec = pl.BlockSpec((E, d2), lambda i: (0, 0))
    vec_spec = pl.BlockSpec((1, d2), lambda i: (0, 0))

    scale, shift = pl.pallas_call(
        functools.partial(_stats_kernel, n_total=N, tile=tile,
                          needs_mask=needs_mask),
        out_shape=(jax.ShapeDtypeStruct((1, d2), jnp.float32),
                   jax.ShapeDtypeStruct((1, d2), jnp.float32)),
        grid=(n_tiles,),
        in_specs=[x_spec, w_spec, vec_spec, vec_spec],
        out_specs=(vec_spec, vec_spec),
        scratch_shapes=[pltpu.VMEM((1, d2), jnp.float32),
                        pltpu.VMEM((1, d2), jnp.float32),
                        pltpu.VMEM((1, d2), jnp.float32)],
        compiler_params=pltpu.CompilerParams(
            dimension_semantics=("arbitrary",)),
    )(x_bf, w_bf, g, b)

    out_z, out_c = pl.pallas_call(
        functools.partial(_normalize_kernel, d=D),
        out_shape=out_sds,
        grid=(n_tiles,),
        in_specs=[x_spec, w_spec, vec_spec, vec_spec],
        out_specs=(pl.BlockSpec((tile, D), lambda i: (i, 0)),
                   pl.BlockSpec((tile, D), lambda i: (i, 0))),
        compiler_params=pltpu.CompilerParams(
            dimension_semantics=("parallel",)),
    )(x_bf, w_bf, scale, shift)
    return out_z, out_c, embed


# ---------------------------------------------------------------------------
# Parameter init (matches module shapes) and pure-JAX reference
# ---------------------------------------------------------------------------

def init_params(key, num_nodes, embed_dim, dec_embed_dim):
    """Deterministic synthetic parameter init (matches module shapes)."""
    ks = jax.random.split(key, 6)
    bound = 1.0 / jnp.sqrt(embed_dim)

    def linear(kw, kb):
        w = jax.random.uniform(kw, (embed_dim, dec_embed_dim), jnp.float32,
                               minval=-bound, maxval=bound)  # stored transposed: (E, D)
        bias = jax.random.uniform(kb, (1, dec_embed_dim), jnp.float32,
                                  minval=-bound, maxval=bound)
        return w, bias

    w_z, b_z = linear(ks[0], ks[1])
    w_c, b_c = linear(ks[2], ks[3])

    return {
        "embed_table": jax.random.normal(ks[4], (num_nodes, embed_dim), jnp.float32),
        # Linear biases kept for module fidelity but mathematically cancelled by
        # training-mode BatchNorm, so the kernels never read them.
        "w_u_z1": w_z, "b_u_z1": b_z,
        "gamma_u_z1": jnp.ones((1, dec_embed_dim), jnp.float32),
        "beta_u_z1": jnp.zeros((1, dec_embed_dim), jnp.float32),
        "w_u_c1": w_c, "b_u_c1": b_c,
        "gamma_u_c1": jnp.ones((1, dec_embed_dim), jnp.float32),
        "beta_u_c1": jnp.zeros((1, dec_embed_dim), jnp.float32),
    }


def _reference_forward(embed, params):
    """Pure-JAX reference of Linear -> BatchNorm1d(train) -> ReLU (with bias)."""
    def branch(w, bias, g, beta):
        h = jnp.dot(embed, w, precision=jax.lax.Precision.HIGHEST) + bias
        mean = h.mean(axis=0, keepdims=True)
        var = ((h - mean) ** 2).mean(axis=0, keepdims=True)
        return jnp.maximum((h - mean) / jnp.sqrt(var + EPS) * g + beta, 0.0)

    z = branch(params["w_u_z1"], params["b_u_z1"],
               params["gamma_u_z1"], params["beta_u_z1"])
    c = branch(params["w_u_c1"], params["b_u_c1"],
               params["gamma_u_c1"], params["beta_u_c1"])
    return z, c


if __name__ == "__main__":
    NUM_NODES = 20      # vocabulary size of enc_u
    EMBED_DIM = 32      # enc_u.embed_dim
    DEC_EMBED_DIM = 16  # dec_embed_dim
    BATCH = 8

    key = jax.random.PRNGKey(0)
    kp, kn, kn2 = jax.random.split(key, 3)
    params = init_params(kp, NUM_NODES, EMBED_DIM, DEC_EMBED_DIM)
    nodes = jax.random.randint(kn, (BATCH,), 0, NUM_NODES)

    # bf16 activations/weights feed the MXU (f32 accumulation), so compare to
    # the f32 reference with a slightly relaxed tolerance.
    TOL = dict(atol=2e-2, rtol=2e-2)

    # Small-batch path (single fused kernel, skinny f32 outputs).
    out_z, out_c, embed = decomposing_network_1_forward(nodes, params)
    jax.block_until_ready((out_z, out_c, embed))
    assert out_z.shape == (BATCH, DEC_EMBED_DIM)
    assert out_c.shape == (BATCH, DEC_EMBED_DIM)
    assert embed.shape == (BATCH, EMBED_DIM)

    ref_z, ref_c = _reference_forward(embed, params)
    assert jnp.allclose(out_z, ref_z, **TOL)
    assert jnp.allclose(out_c, ref_c, **TOL)

    # Large-batch / ragged path (grid over N, two-phase global BN stats,
    # in-kernel tail masking, no wrapper-side padding).
    nodes_big = jax.random.randint(kn2, (300,), 0, NUM_NODES)
    oz, oc, em = decomposing_network_1_forward(nodes_big, params,
                                               force_tiled=True, tile_n=128)
    jax.block_until_ready((oz, oc))
    assert oz.shape == (300, DEC_EMBED_DIM) and oc.shape == (300, DEC_EMBED_DIM)
    rz, rc = _reference_forward(em, params)
    assert jnp.allclose(oz, rz, **TOL)
    assert jnp.allclose(oc, rc, **TOL)

    print("KERNEL_OK")
</pallas_src>

<mosaic_0001>
module attributes {stable_mosaic.version = 11 : i64} {
  func.func @_fused_kernel(%arg0: memref<8x32xbf16, #tpu.memory_space<vmem>>, %arg1: memref<32x32xbf16, #tpu.memory_space<vmem>>, %arg2: memref<1x32xf32, #tpu.memory_space<vmem>>, %arg3: memref<1x32xf32, #tpu.memory_space<vmem>>, %arg4: memref<8x16xf32, #tpu.memory_space<vmem>>, %arg5: memref<8x16xf32, #tpu.memory_space<vmem>>) attributes {dimension_semantics = [], scalar_prefetch = 0 : i64, scratch_operands = 0 : i64, tpu.core_type = #tpu.core_type<tc>} {
    %c0 = arith.constant 0 : index
    %c0_0 = arith.constant 0 : index
    %0 = vector.load %arg0[%c0, %c0_0] : memref<8x32xbf16, #tpu.memory_space<vmem>>, vector<8x32xbf16>
    %c0_1 = arith.constant 0 : index
    %c0_2 = arith.constant 0 : index
    %1 = vector.load %arg1[%c0_1, %c0_2] : memref<32x32xbf16, #tpu.memory_space<vmem>>, vector<32x32xbf16>
    %cst = arith.constant dense<0.000000e+00> : vector<8x32xf32>
    %2 = tpu.matmul %0, %1, %cst {dimension_numbers = #tpu.dot_dimension_numbers<[1], [0], [0], [1], [0, 0, 1, 1], [], []>} : vector<8x32xbf16>, vector<32x32xbf16>, vector<8x32xf32> -> vector<8x32xf32>
    %cst_3 = arith.constant dense<0.000000e+00> : vector<32xf32>
    %3 = vector.multi_reduction <add>, %2, %cst_3 [0] : vector<8x32xf32> to vector<32xf32>
    %4 = vector.shape_cast %3 : vector<32xf32> to vector<1x32xf32>
    %cst_4 = arith.constant 8.000000e+00 : f32
    %5 = vector.broadcast %cst_4 : f32 to vector<1x32xf32>
    %6 = arith.divf %4, %5 : vector<1x32xf32>
    %7 = vector.broadcast %6 : vector<1x32xf32> to vector<8x32xf32>
    %8 = arith.subf %2, %7 : vector<8x32xf32>
    %9 = arith.mulf %8, %8 : vector<8x32xf32>
    %cst_5 = arith.constant dense<0.000000e+00> : vector<32xf32>
    %10 = vector.multi_reduction <add>, %9, %cst_5 [0] : vector<8x32xf32> to vector<32xf32>
    %11 = vector.shape_cast %10 : vector<32xf32> to vector<1x32xf32>
    %cst_6 = arith.constant 8.000000e+00 : f32
    %12 = vector.broadcast %cst_6 : f32 to vector<1x32xf32>
    %13 = arith.divf %11, %12 : vector<1x32xf32>
    %c0_7 = arith.constant 0 : index
    %c0_8 = arith.constant 0 : index
    %14 = vector.load %arg2[%c0_7, %c0_8] : memref<1x32xf32, #tpu.memory_space<vmem>>, vector<1x32xf32>
    %cst_9 = arith.constant 9.99999974E-6 : f32
    %15 = vector.broadcast %cst_9 : f32 to vector<1x32xf32>
    %16 = arith.addf %13, %15 : vector<1x32xf32>
    %17 = math.rsqrt %16 : vector<1x32xf32>
    %18 = arith.mulf %14, %17 : vector<1x32xf32>
    %19 = vector.broadcast %18 : vector<1x32xf32> to vector<8x32xf32>
    %20 = arith.mulf %8, %19 : vector<8x32xf32>
    %c0_10 = arith.constant 0 : index
    %c0_11 = arith.constant 0 : index
    %21 = vector.load %arg3[%c0_10, %c0_11] : memref<1x32xf32, #tpu.memory_space<vmem>>, vector<1x32xf32>
    %22 = vector.broadcast %21 : vector<1x32xf32> to vector<8x32xf32>
    %23 = arith.addf %20, %22 : vector<8x32xf32>
    %cst_12 = arith.constant 0.000000e+00 : f32
    %24 = vector.broadcast %cst_12 : f32 to vector<8x32xf32>
    %25 = arith.maximumf %23, %24 : vector<8x32xf32>
    %26 = vector.extract_strided_slice %25 {offsets = [0, 0], sizes = [8, 16], strides = [1, 1]} : vector<8x32xf32> to vector<8x16xf32>
    %c0_13 = arith.constant 0 : index
    %c0_14 = arith.constant 0 : index
    %27 = vector.load %arg4[%c0_13, %c0_14] : memref<8x16xf32, #tpu.memory_space<vmem>>, vector<8x16xf32>
    tpu.vector_store %arg4[%c0_13, %c0_14], %26 {strides = array<i32>} : memref<8x16xf32, #tpu.memory_space<vmem>>, vector<8x16xf32>,
    %28 = vector.extract_strided_slice %25 {offsets = [0, 16], sizes = [8, 16], strides = [1, 1]} : vector<8x32xf32> to vector<8x16xf32>
    %c0_15 = arith.constant 0 : index
    %c0_16 = arith.constant 0 : index
    %29 = vector.load %arg5[%c0_15, %c0_16] : memref<8x16xf32, #tpu.memory_space<vmem>>, vector<8x16xf32>
    tpu.vector_store %arg5[%c0_15, %c0_16], %28 {strides = array<i32>} : memref<8x16xf32, #tpu.memory_space<vmem>>, vector<8x16xf32>,
    return
  }
}

</mosaic_0001>

<bundles_post_ra>
// kernel: tpu_custom_call.1
= control target key start
LH: loop header
LB: loop body
LE: loop exit
PB: predicated region body
PF: predicated region fallthrough
CT: control target
= control target key end

     0   :  { %11 = vsyncpa [#allocation3], 0  ;;  %s414_s0 = inlined_call_operand.hbm [shape: bf16[8,32], index: 0, kind: input, shape index: {}]   ;;  %s415_s1 = inlined_call_operand.hbm [shape: bf16[32,32], index: 1, kind: input, shape index: {}]   ;;  %s416_s2 = inlined_call_operand.vmem [shape: f32[1,32], index: 2, kind: input, shape index: {}]   ;;  %s417_s3 = inlined_call_operand.vmem [shape: f32[1,32], index: 3, kind: input, shape index: {}]   ;;  %s418_s4 = inlined_call_operand.hbm [shape: f32[8,16], index: 4, kind: output, shape index: {0}]   ;;  %s419_s5 = inlined_call_operand.hbm [shape: f32[8,16], index: 5, kind: output, shape index: {1}]  }
   0x1   :  { %12 = vsyncpa [#allocation6], 0 }
   0x2   :  { %13 = vsyncpa [#allocation4], 0 }
   0x3   :  { %14 = vsyncpa [#allocation9], 0  ;;  %s309_s18 = smov [#allocation2]   ;;  %s310_s20 = smov [#allocation5]  }
   0x4   :  { %s21_s19 = sshll.u32 %s309_s18, 4  ;;  %s30_s21 = sshll.u32 %s310_s20, 4  ;;  %s22_s19 = int_to_ptr.vmem [resolvable:$true] %s21_s19  ;;  %s348_s21 = int_to_ptr.vmem [resolvable:$true] %s30_s21 }
   0x5   :  { %s213_s24 = scalar_lea.hbm %s414_s0, 64 }
   0x6   :  { %p214_p0 = scmp.ne.s32.totalorder %s414_s0, %s213_s24  ;;  %p217_p1 = scmp.lt.u32.totalorder %s213_s24, %s414_s0 }
   0x8   :  { %p219_p2 = pnand %p217_p1, %p214_p0 }
   0xa   :  { %222 = shalt.err (!%p219_p2)
}
   0xb   :  { %s223_s29 = scalar_lea.vmem %s22_s19, 64  ;;  %p228_p4 = scmp.lt.s32.totalorder %s22_s19, %s22_s19 }
   0xc   :  { %p224_p3 = scmp.ne.s32.totalorder %s22_s19, %s223_s29  ;;  %p229_p5 = scmp.lt.s32.totalorder %s223_s29, %s223_s29 }
   0xe   :  { %p230_p6 = por %p229_p5, %p228_p4 }
  0x10   :  { %p231_p7 = pnand %p230_p6, %p224_p3 }
  0x12   :  { %234 = shalt.err (!%p231_p7)
}
  0x13   :  { %24 = dma.hbm_to_vmem [thread:$0]  %s414_s0, 64, %s22_s19, [#allocation3]  }
  0x14   :  { %s235_s9 = scalar_lea.hbm %s415_s1, 256 }
  0x15   :  { %p236_p8 = scmp.ne.s32.totalorder %s415_s1, %s235_s9  ;;  %p239_p9 = scmp.lt.u32.totalorder %s235_s9, %s415_s1 }
  0x17   :  { %p241_p10 = pnand %p239_p9, %p236_p8 }
  0x19   :  { %244 = shalt.err (!%p241_p10)
}
  0x1a   :  { %s245_s14 = scalar_lea.vmem %s348_s21, 256  ;;  %p250_p12 = scmp.lt.s32.totalorder %s348_s21, %s348_s21 }
  0x1b   :  { %p246_p11 = scmp.ne.s32.totalorder %s348_s21, %s245_s14  ;;  %p251_p13 = scmp.lt.s32.totalorder %s245_s14, %s245_s14 }
  0x1d   :  { %p252_p0 = por %p251_p13, %p250_p12 }
  0x1f   :  { %p253_p1 = pnand %p252_p0, %p246_p11 }
  0x21   :  { %256 = shalt.err (!%p253_p1)
}
  0x22   :  { %s311_s0 = smov 64   ;;  %s312_s15 = smov 4  }
  0x23   :  { %36 = dma.hbm_to_vmem [thread:$0]  %s415_s1, 256, %s348_s21, [#allocation6], %s311_s0, %s311_s0, %s312_s15  }
  0x24   :  { %301 = dma.done.wait [#allocation3], 64  }
  0x25   :  { %302 = vsyncadd [#allocation3], 4294967232 }
  0x26   :  { %303 = dma.done.wait [#allocation6], 256  }
  0x27   :  { %304 = vsyncadd [#allocation6], 4294967040  ;;  %v313_v0 = vmov 0.0   ;;  %vm314_vm0 = vmmov 0   ;;  %v209_v1 = vld [vmem:[#allocation5] sm:$0xff]   ;;  %v210_v2 = vld [vmem:[#allocation5 + $0x8] sm:$0xff]   ;;  %v133_v27 = vlaneseq }
  0x28   :  { %192 = vmatprep.subr.bf16.mxu0 %v313_v0  ;;  %196 = vmatprep.mubr.msk.bf16.mxu0 %vm314_vm0, %v313_v0  ;;  %v48_v3 = vld [vmem:[#allocation2] sm:$0xf]  ;;  %vm65_vm1 = vcmask 261120   ;;  %s315_s21 = smov [#allocation7]   ;;  %vm148_vm2 = vcmask 130048   ;;  %s316_s23 = smov 112  }
  0x29   :  { %193 = vmatpush3.bf16.msra.mxu0 %v209_v1  ;;  %v134_v28 = vshrl.u32 %v133_v27, 7  ;;  %v128_v29 = vld [vmem:[%s416_s2] sm:$0x1]  ;;  %s161_s22 = sshll.u32 %s315_s21, 4  ;;  %s162_s22 = int_to_ptr.vmem [resolvable:$true] %s161_s22 }
  0x2a   :  { %194 = vmatprep.subr.bf16.mxu0 %v313_v0  ;;  %v188_v34 = vld [vmem:[%s417_s3] ss:$0 sm:$0xff]  ;;  %s257_s2 = scalar_lea.vmem %s162_s22, 128  ;;  %p262_p3 = scmp.lt.s32.totalorder %s162_s22, %s162_s22 }
  0x2b   :  { %v135_v30 = vsub.s32 0, %v134_v28  ;;  %p258_p2 = scmp.ne.s32.totalorder %s162_s22, %s257_s2  ;;  %p263_p4 = scmp.lt.s32.totalorder %s257_s2, %s257_s2 }
  0x2d   :  { %195 = vmatpush3.bf16.msra.mxu0 %v210_v2  ;;  %p264_p5 = por %p263_p4, %p262_p3 }
  0x2f   :  { %p265_p6 = pnand %p264_p5, %p258_p2 }
  0x30   :  { %197 = vmatmul.mubr.msk.bf16.vlgmr.msra.gmra.mrb[0].mxu0 %vm65_vm1, %v48_v3 }
 0x103   :  { %v103_v4 = vpop.f32.mrb[0].mxu0 }
 0x104   :  { %v109_v5 = vsel %vm65_vm1, %v103_v4, 0.0  ;;  %v198_v6 = vpop.f32.mrb[1].mxu0 }
 0x105   :  { %v110_v7 = vrot.slane %v109_v5, 4  ;;  %v106_v8 = vpop.f32.mrb[2].mxu0 }
 0x106   :  { %v199_v9 = vpop.f32.mrb[3].mxu0 }
 0x107   :  { %v111_v10 = vadd.f32 %v110_v7, %v109_v5 }
 0x109   :  { %v112_v11 = vrot.slane %v111_v10, 2 }
 0x10b   :  { %v113_v12 = vadd.f32 %v112_v11, %v111_v10 }
 0x10d   :  { %v114_v13 = vrot.slane %v113_v12, 1 }
 0x10f   :  { %v115_v14 = vadd.f32 %v114_v13, %v113_v12 }
 0x111   :  { %v117_v15 = vmul.f32 0.125, %v115_v14 }
 0x113   :  { %v118_v16 = vsub.f32 %v103_v4, %v117_v15 }
 0x115   :  { %v119_v17 = vmul.f32 %v118_v16, %v118_v16 }
 0x117   :  { %v120_v18 = vsel %vm65_vm1, %v119_v17, 0.0 }
 0x118   :  { %v121_v19 = vrot.slane %v120_v18, 4 }
 0x11a   :  { %v122_v20 = vadd.f32 %v121_v19, %v120_v18 }
 0x11c   :  { %v123_v21 = vrot.slane %v122_v20, 2 }
 0x11e   :  { %v124_v22 = vadd.f32 %v123_v21, %v122_v20 }
 0x120   :  { %v125_v23 = vrot.slane %v124_v22, 1 }
 0x122   :  { %v126_v24 = vadd.f32 %v125_v23, %v124_v22 }
 0x124   :  { %v127_v25 = vmul.f32 0.125, %v126_v24 }
 0x126   :  { %v129_v26 = vadd.f32 1e-05, %v127_v25 }
 0x128   :  { %211 = vrsqrt.f32 %v129_v26 }
 0x132   :  { %v212_v31 = vpop.eup %211 }
 0x133   :  { %v131_v32 = vmul.f32 %v212_v31, %v128_v29 }
 0x135   :  { %v136_v33 = vrot.slane %v131_v32, %v135_v30 }
 0x137   :  { %v138_v35 = vmul.f32 %v136_v33, %v118_v16 }
 0x139   :  { %v146_v36 = vadd.f32 %v188_v34, %v138_v35 }
 0x13b   :  { %v147_v37 = vmax.f32 %v146_v36, 0.0 }
 0x13d   :  { %151 = vrot.lane.b32.xlu0 %v147_v37, %s316_s23  ;;  %149 = vst.msk [vmem:[#allocation7] sm:$0xff] %vm148_vm2, %v147_v37 }
 0x13e   :  { %268 = shalt.err (!%p265_p6)
}
 0x13f   :  { %s269_s25 = scalar_lea.hbm %s418_s4, 128 }
 0x140   :  { %p270_p7 = scmp.ne.s32.totalorder %s418_s4, %s269_s25  ;;  %p273_p8 = scmp.lt.u32.totalorder %s269_s25, %s418_s4 }
 0x142   :  { %p275_p9 = pnand %p273_p8, %p270_p7 }
 0x144   :  { %278 = shalt.err (!%p275_p9)
}
 0x145   :  { %164 = dma.vmem_to_hbm [thread:$0]  %s162_s22, 128, %s418_s4, [#allocation4]  }
 0x146   :  { %s317_s7 = smov [#allocation8]  }
 0x147   :  { %s171_s8 = sshll.u32 %s317_s7, 4  ;;  %s172_s8 = int_to_ptr.vmem [resolvable:$true] %s171_s8 }
 0x148   :  { %s279_s9 = scalar_lea.vmem %s172_s8, 128  ;;  %p284_p11 = scmp.lt.s32.totalorder %s172_s8, %s172_s8 }
 0x149   :  { %p280_p10 = scmp.ne.s32.totalorder %s172_s8, %s279_s9  ;;  %p285_p12 = scmp.lt.s32.totalorder %s279_s9, %s279_s9 }
 0x14b   :  { %p286_p13 = por %p285_p12, %p284_p11 }
 0x14d   :  { %p287_p0 = pnand %p286_p13, %p280_p10 }
 0x1af   :  { %v152_v38 = vpop.permute.xlu0 %151 }
 0x1b0   :  { %154 = vst.msk [vmem:[#allocation8] sm:$0xff] %vm148_vm2, %v152_v38 }
 0x1b1   :  { %290 = shalt.err (!%p287_p0)
}
 0x1b2   :  { %s291_s12 = scalar_lea.hbm %s419_s5, 128 }
 0x1b3   :  { %p292_p1 = scmp.ne.s32.totalorder %s419_s5, %s291_s12  ;;  %p295_p2 = scmp.lt.u32.totalorder %s291_s12, %s419_s5 }
 0x1b5   :  { %p297_p3 = pnand %p295_p2, %p292_p1 }
 0x1b7   :  { %300 = shalt.err (!%p297_p3)
}
 0x1b8   :  { %174 = dma.vmem_to_hbm [thread:$0]  %s172_s8, 128, %s419_s5, [#allocation9]  }
 0x1b9   :  { %305 = dma.done.wait [#allocation4], 128  }
 0x1ba   :  { %306 = vsyncadd [#allocation4], 4294967168 }
 0x1bb   :  { %307 = dma.done.wait [#allocation9], 128  }
 0x1bc   :  { %308 = vsyncadd [#allocation9], 4294967168 }
 0x1bd   :  { %181 = vsyncpa [#allocation3], 1 }
 0x1be   :  { %182 = vsyncpa [#allocation6], 1 }
 0x1bf   :  { %183 = vsyncpa [#allocation4], 1 }
 0x1c0   :  { %184 = vsyncpa [#allocation9], 1 }

</bundles_post_ra>
